<compile_context>
chip_gen: v6e
topology: v6e:2x2x1
jax: 0.10.0
libtpu: 0.0.40
codegen_flags: <defaults>
</compile_context>

<pallas_src>
import functools

import jax
import jax.numpy as jnp
import numpy as np
from jax.experimental import pallas as pl
from jax.experimental.pallas import tpu as pltpu

EPS = 1e-5
_FLAT_MAX_C = 64     # use the lane-dense flattened path when C <= this
_LANE = 128
_SUBLANE = 8


def _round_up(x, m):
    return -(-x // m) * m


def _chip_info():
    """Best-effort chip query -> (tensorcores_per_device, vmem_capacity_bytes)."""
    kind = ""
    try:
        kind = jax.devices()[0].device_kind.lower()
    except Exception:
        pass
    num_cores = 2 if "v7" in kind else 1          # v5e / v6e are single-TC
    vmem_cap = None
    try:
        vmem_cap = getattr(pltpu.get_tpu_info(), "vmem_capacity_bytes", None)
    except Exception:
        vmem_cap = None
    if vmem_cap is None:
        vmem_cap = 64 * 1024 * 1024 if "v7" in kind else 128 * 1024 * 1024
    return num_cores, int(vmem_cap)


def _iw_loss_flat_kernel(f_ref, rmat_ref, smat_ref, eps_eye_ref, mask_ref,
                         out_ref, *, apply_eps_eye):
    """Lane-dense path: everything works on a flattened (tb, C*C) block.

    f_ref:       (tb, C)      rows of f_map
    rmat_ref:    (C, C*C)     resident; inv * onehot(l // C)  ->  f@R = inv*f[:, l//C]
    smat_ref:    (C, C*C)     resident; onehot(l % C)         ->  f@S = f[:, l%C]
    eps_eye_ref: (1, C*C)     resident; EPS * eye, flattened
    mask_ref:    (tb, C*C)    streamed mask rows (flattened, lane-dense)
    out_ref:     (1, 1, C*C)  per-core partial-sum accumulator (resident)
    """
    step = pl.program_id(1)

    @pl.when(step == 0)
    def _init():
        out_ref[...] = jnp.zeros_like(out_ref)

    f = f_ref[...].astype(jnp.float32)                                   # (tb, C)
    # Flattened outer product via two tiny MXU matmuls (keeps the whole block
    # lane-dense; no in-kernel reshape / relayout of the big block).
    a = jnp.dot(f, rmat_ref[...], preferred_element_type=jnp.float32)    # inv*f[:, i]
    b = jnp.dot(f, smat_ref[...], preferred_element_type=jnp.float32)    # f[:, j]
    f_cor = a * b                                                        # (tb, C*C)
    if apply_eps_eye:
        f_cor = f_cor + eps_eye_ref[...]                                 # bcast (1, CC)
    contrib = jnp.abs(f_cor * mask_ref[...].astype(jnp.float32))         # fused abs
    out_ref[...] += jnp.sum(contrib, axis=0, keepdims=True)[None]


def _iw_loss_3d_kernel(f_ref, eps_eye_ref, mask_ref, out_ref, *, inv,
                       apply_eps_eye):
    """General path for larger C: (tb, C, C) blocks (lane-dense when C % 128 == 0)."""
    step = pl.program_id(1)

    @pl.when(step == 0)
    def _init():
        out_ref[...] = jnp.zeros_like(out_ref)

    f = f_ref[...].astype(jnp.float32)                        # (tb, C)
    a = f * inv                                               # fold 1/(BN-1) once
    f_cor = a[:, :, None] * f[:, None, :]                     # (tb, C, C)
    if apply_eps_eye:
        f_cor = f_cor + eps_eye_ref[...][None]
    contrib = jnp.abs(f_cor * mask_ref[...].astype(jnp.float32))   # fused abs
    out_ref[...] += jnp.sum(contrib, axis=0)[None]


def iw_loss(f_map, eye, mask_matrix, margin=None, num_remove_cov=None, *,
            assume_masked_diagonal=False, target_block_bytes=None):
    """Pallas implementation of IWLoss.forward. Returns a float32 scalar.

    assume_masked_diagonal: fast path that skips the eps*eye add; only valid
    when eps*eye*mask_matrix == 0 elementwise (identity eye + zero-diag mask).
    """
    del margin, num_remove_cov   # unused by the reference forward pass

    bn, c = f_map.shape
    assert eye.shape == (c, c)
    assert mask_matrix.shape == (bn, c, c)

    if bn <= 1:
        # Degenerate case: reproduce the reference's divide-by-zero behavior
        # exactly (inf/nan) instead of hitting 0*inf inside the kernel.
        f32 = f_map.astype(jnp.float32)
        f_cor = (f32[:, :, None] * f32[:, None, :]) / (bn - 1) \
            + EPS * eye.astype(jnp.float32)[None]
        return jnp.sum(jnp.abs(f_cor * mask_matrix.astype(jnp.float32))) / bn

    inv = 1.0 / (bn - 1)
    apply_eps_eye = not assume_masked_diagonal

    num_cores, vmem_cap = _chip_info()
    # Leave slack for double-buffered mask blocks + f32 temporaries.
    vmem_limit = min(vmem_cap * 3 // 4, 100 * 1024 * 1024)
    if target_block_bytes is None:
        target_block_bytes = (8 * 1024 * 1024 if vmem_cap >= 96 * 1024 * 1024
                              else 4 * 1024 * 1024)

    use_flat = c <= _FLAT_MAX_C
    cc = c * c
    mask_itemsize = jnp.dtype(mask_matrix.dtype).itemsize
    # Padded-(8,128)-layout-aware VMEM cost of one streamed mask row.
    if use_flat:
        row_bytes = _round_up(cc, _LANE) * mask_itemsize
    else:
        row_bytes = _round_up(c, _SUBLANE) * _round_up(c, _LANE) * mask_itemsize

    rows_for_target = max(_SUBLANE,
                          (target_block_bytes // row_bytes) // _SUBLANE * _SUBLANE)
    rows_per_core = _round_up(-(-bn // num_cores), _SUBLANE)
    tb = min(rows_for_target, rows_per_core)
    steps = -(-bn // (num_cores * tb))
    padded_bn = num_cores * tb * steps

    pad = padded_bn - bn
    if pad:
        # Zero-padded mask rows contribute exactly 0 to the sum.
        f_map = jnp.pad(f_map, ((0, pad), (0, 0)))
        mask_matrix = jnp.pad(mask_matrix, ((0, pad), (0, 0), (0, 0)))

    eps_eye = EPS * eye.astype(jnp.float32)

    if num_cores > 1:
        # 2-TensorCore chip: shard the leading axis across cores.
        dims = (pltpu.CORE_PARALLEL, pltpu.ARBITRARY)
    else:
        dims = ("arbitrary", "arbitrary")
    cparams = pltpu.CompilerParams(dimension_semantics=dims,
                                   vmem_limit_bytes=int(vmem_limit))
    # TODO(synk): if the mask DMA is still exposed on v7x traces, add
    # pipeline_mode=pl.Buffered(3) on the mask BlockSpec.

    if use_flat:
        # Contiguous reshape to a lane-dense last dim (free at the XLA level).
        mask_flat = mask_matrix.reshape(padded_bn, cc)
        eps_eye_flat = eps_eye.reshape(1, cc)
        # One-hot "repeat"/"tile" matrices so the outer product is built on the
        # MXU directly in flattened layout (inv folded into R).
        li = np.arange(cc) // c
        lj = np.arange(cc) % c
        rmat = jnp.asarray((np.arange(c)[:, None] == li[None, :])
                           .astype(np.float32) * np.float32(inv))
        smat = jnp.asarray((np.arange(c)[:, None] == lj[None, :])
                           .astype(np.float32))

        kernel = functools.partial(_iw_loss_flat_kernel,
                                   apply_eps_eye=apply_eps_eye)
        partials = pl.pallas_call(
            kernel,
            out_shape=jax.ShapeDtypeStruct((num_cores, 1, cc), jnp.float32),
            grid_spec=pltpu.PrefetchScalarGridSpec(
                num_scalar_prefetch=0,
                grid=(num_cores, steps),
                in_specs=[
                    pl.BlockSpec((tb, c), lambda p, i: (p * steps + i, 0)),
                    pl.BlockSpec((c, cc), lambda p, i: (0, 0)),   # resident
                    pl.BlockSpec((c, cc), lambda p, i: (0, 0)),   # resident
                    pl.BlockSpec((1, cc), lambda p, i: (0, 0)),   # resident
                    pl.BlockSpec((tb, cc), lambda p, i: (p * steps + i, 0)),
                ],
                out_specs=pl.BlockSpec((1, 1, cc), lambda p, i: (p, 0, 0)),
            ),
            compiler_params=cparams,
        )(f_map, rmat, smat, eps_eye_flat, mask_flat)
    else:
        kernel = functools.partial(_iw_loss_3d_kernel, inv=inv,
                                   apply_eps_eye=apply_eps_eye)
        partials = pl.pallas_call(
            kernel,
            out_shape=jax.ShapeDtypeStruct((num_cores, c, c), jnp.float32),
            grid_spec=pltpu.PrefetchScalarGridSpec(
                num_scalar_prefetch=0,
                grid=(num_cores, steps),
                in_specs=[
                    pl.BlockSpec((tb, c), lambda p, i: (p * steps + i, 0)),
                    pl.BlockSpec((c, c), lambda p, i: (0, 0)),    # resident
                    pl.BlockSpec((tb, c, c), lambda p, i: (p * steps + i, 0, 0)),
                ],
                out_specs=pl.BlockSpec((1, c, c), lambda p, i: (p, 0, 0)),
            ),
            compiler_params=cparams,
        )(f_map, eps_eye, mask_matrix)

    # Tiny final reduction and /BN normalization outside the kernel.
    return jnp.sum(partials) / bn


if __name__ == "__main__":
    key = jax.random.PRNGKey(0)
    k1, k2, k3 = jax.random.split(key, 3)

    def reference(f_map, eye, mask):
        bn = f_map.shape[0]
        outer = f_map[:, :, None] * f_map[:, None, :]
        f_cor = outer / (bn - 1) + EPS * eye[None]
        return jnp.sum(jnp.abs(f_cor * mask)) / bn

    # --- Test 1: lane-dense flattened path (C < 128) ------------------------
    BN, C = 16, 32
    f_map = jax.random.normal(k1, (BN, C), dtype=jnp.float32)
    eye = jnp.eye(C, dtype=jnp.float32)
    mask = jnp.broadcast_to(1.0 - eye, (BN, C, C)).astype(jnp.float32)

    loss = jax.block_until_ready(iw_loss(f_map, eye, mask, 0.0, 0))
    ref = reference(f_map, eye, mask)
    assert jnp.allclose(loss, ref, rtol=1e-4, atol=1e-4), (float(loss), float(ref))

    # Fast path is valid here (identity eye, zero-diagonal mask).
    loss_fast = jax.block_until_ready(
        iw_loss(f_map, eye, mask, 0.0, 0, assume_masked_diagonal=True))
    assert jnp.allclose(loss_fast, ref, rtol=1e-4, atol=1e-4), (
        float(loss_fast), float(ref))

    # --- Test 2: general 3-D path (C multiple of 128) ------------------------
    BN2, C2 = 16, 128
    f_map2 = jax.random.normal(k2, (BN2, C2), dtype=jnp.float32)
    eye2 = jnp.eye(C2, dtype=jnp.float32)
    mask2 = jax.random.normal(k3, (BN2, C2, C2), dtype=jnp.float32)

    loss2 = jax.block_until_ready(iw_loss(f_map2, eye2, mask2, 0.0, 0))
    ref2 = reference(f_map2, eye2, mask2)
    assert jnp.allclose(loss2, ref2, rtol=5e-4, atol=1e-2), (
        float(loss2), float(ref2))

    print("KERNEL_OK")
</pallas_src>

<mosaic_0001>
module attributes {stable_mosaic.version = 11 : i64} {
  func.func @_iw_loss_flat_kernel(%arg0: i32, %arg1: i32, %arg2: memref<16x32xf32, #tpu.memory_space<vmem>>, %arg3: memref<32x1024xf32, #tpu.memory_space<vmem>>, %arg4: memref<32x1024xf32, #tpu.memory_space<vmem>>, %arg5: memref<1x1024xf32, #tpu.memory_space<vmem>>, %arg6: memref<16x1024xf32, #tpu.memory_space<vmem>>, %arg7: memref<1x1x1024xf32, #tpu.memory_space<vmem>>) attributes {dimension_semantics = [#tpu.dimension_semantics<arbitrary>, #tpu.dimension_semantics<arbitrary>], iteration_bounds = array<i64: 1, 1>, scalar_prefetch = 0 : i64, scratch_operands = 0 : i64, tpu.core_type = #tpu.core_type<tc>, window_params = [{transform_indices = @transform_0, window_bounds = array<i64: 16, 32>}, {pipeline_mode = #tpu.pipeline_mode<synchronous>, transform_indices = @transform_1, window_bounds = array<i64: 32, 1024>}, {pipeline_mode = #tpu.pipeline_mode<synchronous>, transform_indices = @transform_2, window_bounds = array<i64: 32, 1024>}, {pipeline_mode = #tpu.pipeline_mode<synchronous>, transform_indices = @transform_3, window_bounds = array<i64: 1, 1024>}, {transform_indices = @transform_4, window_bounds = array<i64: 16, 1024>}, {transform_indices = @transform_5, window_bounds = array<i64: 1, 1, 1024>}]} {
    %c0_i32 = arith.constant 0 : i32
    %0 = arith.cmpi eq, %arg1, %c0_i32 : i32
    %1 = arith.extui %0 : i1 to i32
    %c0_i32_0 = arith.constant 0 : i32
    %2 = arith.cmpi ne, %1, %c0_i32_0 : i32
    scf.if %2 {
      %cst_18 = arith.constant 0.000000e+00 : f32
      %21 = vector.broadcast %cst_18 : f32 to vector<1x1x1024xf32>
      %c0_19 = arith.constant 0 : index
      %c0_20 = arith.constant 0 : index
      %c0_21 = arith.constant 0 : index
      %22 = vector.load %arg7[%c0_19, %c0_20, %c0_21] : memref<1x1x1024xf32, #tpu.memory_space<vmem>>, vector<1x1x1024xf32>
      tpu.vector_store %arg7[%c0_19, %c0_20, %c0_21], %21 {strides = array<i32>} : memref<1x1x1024xf32, #tpu.memory_space<vmem>>, vector<1x1x1024xf32>,
    } else {
    }
    %c0 = arith.constant 0 : index
    %c0_1 = arith.constant 0 : index
    %3 = vector.load %arg2[%c0, %c0_1] : memref<16x32xf32, #tpu.memory_space<vmem>>, vector<16x32xf32>
    %c0_2 = arith.constant 0 : index
    %c0_3 = arith.constant 0 : index
    %4 = vector.load %arg3[%c0_2, %c0_3] : memref<32x1024xf32, #tpu.memory_space<vmem>>, vector<32x1024xf32>
    %cst = arith.constant dense<0.000000e+00> : vector<16x1024xf32>
    %5 = tpu.matmul %3, %4, %cst {dimension_numbers = #tpu.dot_dimension_numbers<[1], [0], [0], [1], [0, 0, 1, 1], [], []>} : vector<16x32xf32>, vector<32x1024xf32>, vector<16x1024xf32> -> vector<16x1024xf32>
    %c0_4 = arith.constant 0 : index
    %c0_5 = arith.constant 0 : index
    %6 = vector.load %arg4[%c0_4, %c0_5] : memref<32x1024xf32, #tpu.memory_space<vmem>>, vector<32x1024xf32>
    %cst_6 = arith.constant dense<0.000000e+00> : vector<16x1024xf32>
    %7 = tpu.matmul %3, %6, %cst_6 {dimension_numbers = #tpu.dot_dimension_numbers<[1], [0], [0], [1], [0, 0, 1, 1], [], []>} : vector<16x32xf32>, vector<32x1024xf32>, vector<16x1024xf32> -> vector<16x1024xf32>
    %8 = arith.mulf %5, %7 : vector<16x1024xf32>
    %c0_7 = arith.constant 0 : index
    %c0_8 = arith.constant 0 : index
    %9 = vector.load %arg5[%c0_7, %c0_8] : memref<1x1024xf32, #tpu.memory_space<vmem>>, vector<1x1024xf32>
    %10 = vector.broadcast %9 : vector<1x1024xf32> to vector<16x1024xf32>
    %11 = arith.addf %8, %10 : vector<16x1024xf32>
    %c0_9 = arith.constant 0 : index
    %c0_10 = arith.constant 0 : index
    %12 = vector.load %arg6[%c0_9, %c0_10] : memref<16x1024xf32, #tpu.memory_space<vmem>>, vector<16x1024xf32>
    %13 = arith.mulf %11, %12 : vector<16x1024xf32>
    %14 = math.absf %13 : vector<16x1024xf32>
    %c0_11 = arith.constant 0 : index
    %c0_12 = arith.constant 0 : index
    %c0_13 = arith.constant 0 : index
    %15 = vector.load %arg7[%c0_11, %c0_12, %c0_13] : memref<1x1x1024xf32, #tpu.memory_space<vmem>>, vector<1x1x1024xf32>
    %cst_14 = arith.constant dense<0.000000e+00> : vector<1024xf32>
    %16 = vector.multi_reduction <add>, %14, %cst_14 [0] : vector<16x1024xf32> to vector<1024xf32>
    %17 = vector.shape_cast %16 : vector<1024xf32> to vector<1x1024xf32>
    %18 = vector.shape_cast %17 : vector<1x1024xf32> to vector<1x1x1024xf32>
    %19 = arith.addf %15, %18 : vector<1x1x1024xf32>
    %c0_15 = arith.constant 0 : index
    %c0_16 = arith.constant 0 : index
    %c0_17 = arith.constant 0 : index
    %20 = vector.load %arg7[%c0_15, %c0_16, %c0_17] : memref<1x1x1024xf32, #tpu.memory_space<vmem>>, vector<1x1x1024xf32>
    tpu.vector_store %arg7[%c0_15, %c0_16, %c0_17], %19 {strides = array<i32>} : memref<1x1x1024xf32, #tpu.memory_space<vmem>>, vector<1x1x1024xf32>,
    return
  }
  func.func @transform_0(%arg0: i32, %arg1: i32) -> (i32, i32) {
    %c1_i32 = arith.constant 1 : i32
    %0 = arith.muli %arg0, %c1_i32 : i32
    %1 = arith.addi %0, %arg1 : i32
    %c0_i32 = arith.constant 0 : i32
    %c0_i32_0 = arith.constant 0 : i32
    return %1, %c0_i32 : i32, i32
  }
  func.func @transform_1(%arg0: i32, %arg1: i32) -> (i32, i32) {
    %c0_i32 = arith.constant 0 : i32
    %c0_i32_0 = arith.constant 0 : i32
    %c0_i32_1 = arith.constant 0 : i32
    return %c0_i32, %c0_i32_0 : i32, i32
  }
  func.func @transform_2(%arg0: i32, %arg1: i32) -> (i32, i32) {
    %c0_i32 = arith.constant 0 : i32
    %c0_i32_0 = arith.constant 0 : i32
    %c0_i32_1 = arith.constant 0 : i32
    return %c0_i32, %c0_i32_0 : i32, i32
  }
  func.func @transform_3(%arg0: i32, %arg1: i32) -> (i32, i32) {
    %c0_i32 = arith.constant 0 : i32
    %c0_i32_0 = arith.constant 0 : i32
    %c0_i32_1 = arith.constant 0 : i32
    return %c0_i32, %c0_i32_0 : i32, i32
  }
  func.func @transform_4(%arg0: i32, %arg1: i32) -> (i32, i32) {
    %c1_i32 = arith.constant 1 : i32
    %0 = arith.muli %arg0, %c1_i32 : i32
    %1 = arith.addi %0, %arg1 : i32
    %c0_i32 = arith.constant 0 : i32
    %c0_i32_0 = arith.constant 0 : i32
    return %1, %c0_i32 : i32, i32
  }
  func.func @transform_5(%arg0: i32, %arg1: i32) -> (i32, i32, i32) {
    %c0_i32 = arith.constant 0 : i32
    %c0_i32_0 = arith.constant 0 : i32
    %c0_i32_1 = arith.constant 0 : i32
    return %arg0, %c0_i32, %c0_i32_0 : i32, i32, i32
  }
}

</mosaic_0001>

<bundles_post_ra>
// kernel: tpu_custom_call.1
= control target key start
LH: loop header
LB: loop body
LE: loop exit
PB: predicated region body
PF: predicated region fallthrough
CT: control target
= control target key end

     0   :  { %10 = vsyncpa [#allocation3], 0  ;;  %s1376_s0 = inlined_call_operand.hbm [shape: f32[16,32], index: 0, kind: input, shape index: {}]   ;;  %s1377_s1 = inlined_call_operand.hbm [shape: f32[32,1024], index: 1, kind: input, shape index: {}]   ;;  %s1378_s2 = inlined_call_operand.hbm [shape: f32[32,1024], index: 2, kind: input, shape index: {}]   ;;  %s1379_s3 = inlined_call_operand.hbm [shape: f32[1,1024], index: 3, kind: input, shape index: {}]   ;;  %s1380_s4 = inlined_call_operand.hbm [shape: f32[16,1024], index: 4, kind: input, shape index: {}]   ;;  %s1381_s5 = inlined_call_operand.hbm [shape: f32[1,1,1024], index: 5, kind: output, shape index: {}]  }
   0x1   :  { %11 = vsyncpa [#allocation6], 0 }
   0x2   :  { %12 = vsyncpa [#allocation9], 0 }
   0x3   :  { %13 = vsyncpa [#allocation4], 0  ;;  %s1206_s18 = smov [#allocation5]  }
   0x4   :  { %s35_s19 = sshll.u32 %s1206_s18, 4  ;;  %s36_s19 = int_to_ptr.vmem [resolvable:$true] %s35_s19 }
   0x5   :  { %s1086_s20 = scalar_lea.vmem %s36_s19, 4096  ;;  %p1091_p1 = scmp.lt.s32.totalorder %s36_s19, %s36_s19 }
   0x6   :  { %p1087_p0 = scmp.ne.s32.totalorder %s36_s19, %s1086_s20  ;;  %p1092_p2 = scmp.lt.s32.totalorder %s1086_s20, %s1086_s20 }
   0x8   :  { %p1093_p3 = por %p1092_p2, %p1091_p1 }
   0xa   :  { %p1094_p4 = pnand %p1093_p3, %p1087_p0 }
   0xc   :  { %1097 = shalt.err (!%p1094_p4)
}
   0xd   :  { %s1207_s21 = smov 1024   ;;  %s1208_s22 = smov 64  }
   0xe   :  { %41 = dma.hbm_to_vmem [thread:$0]  %s1377_s1, 4096, %s36_s19, [#allocation6], %s1207_s21, %s1207_s21, %s1208_s22  }
   0xf   :  { %s1209_s25 = smov [#allocation8]   ;;  %s1210_s27 = smov [#allocation2]  }
  0x10   :  { %s60_s26 = sshll.u32 %s1209_s25, 4  ;;  %s23_s28 = sshll.u32 %s1210_s27, 4  ;;  %s61_s26 = int_to_ptr.vmem [resolvable:$true] %s60_s26  ;;  %s24_s28 = int_to_ptr.vmem [resolvable:$true] %s23_s28 }
  0x11   :  { %s1106_s29 = scalar_lea.vmem %s61_s26, 128  ;;  %p1111_p6 = scmp.lt.s32.totalorder %s61_s26, %s61_s26 }
  0x12   :  { %p1107_p5 = scmp.ne.s32.totalorder %s61_s26, %s1106_s29  ;;  %p1112_p7 = scmp.lt.s32.totalorder %s1106_s29, %s1106_s29 }
  0x14   :  { %p1113_p8 = por %p1112_p7, %p1111_p6 }
  0x16   :  { %p1114_p9 = pnand %p1113_p8, %p1107_p5 }
  0x18   :  { %1117 = shalt.err (!%p1114_p9)
}
  0x19   :  { %63 = dma.hbm_to_vmem [thread:$0]  %s1379_s3, 128, %s61_s26, [#allocation9]  }
  0x1a   :  { %s1126_s7 = scalar_lea.vmem %s24_s28, 256  ;;  %p1131_p11 = scmp.lt.s32.totalorder %s24_s28, %s24_s28 }
  0x1b   :  { %p1127_p10 = scmp.ne.s32.totalorder %s24_s28, %s1126_s7  ;;  %p1132_p12 = scmp.lt.s32.totalorder %s1126_s7, %s1126_s7 }
  0x1d   :  { %p1133_p13 = por %p1132_p12, %p1131_p11 }
  0x1f   :  { %p1134_p0 = pnand %p1133_p13, %p1127_p10 }
  0x21   :  { %1137 = shalt.err (!%p1134_p0)
}
  0x22   :  { %s1211_s1 = smov 128   ;;  %s1212_s8 = smov 8  }
  0x23   :  { %29 = dma.hbm_to_vmem [thread:$0]  %s1376_s0, 256, %s24_s28, [#allocation3], %s1211_s1, %s1211_s1, %s1212_s8  }
  0x24   :  { %s1213_s11 = smov [#allocation7]   ;;  %s1214_s13 = smov [#allocation10]  }
  0x25   :  { %s47_s12 = sshll.u32 %s1213_s11, 4  ;;  %s74_s14 = sshll.u32 %s1214_s13, 4  ;;  %s48_s12 = int_to_ptr.vmem [resolvable:$true] %s47_s12  ;;  %s75_s14 = int_to_ptr.vmem [resolvable:$true] %s74_s14 }
  0x26   :  { %s1146_s3 = scalar_lea.vmem %s48_s12, 4096  ;;  %p1151_p2 = scmp.lt.s32.totalorder %s48_s12, %s48_s12 }
  0x27   :  { %p1147_p1 = scmp.ne.s32.totalorder %s48_s12, %s1146_s3  ;;  %p1152_p3 = scmp.lt.s32.totalorder %s1146_s3, %s1146_s3 }
  0x29   :  { %p1153_p4 = por %p1152_p3, %p1151_p2 }
  0x2b   :  { %p1154_p5 = pnand %p1153_p4, %p1147_p1 }
  0x2d   :  { %1157 = shalt.err (!%p1154_p5)
}
  0x2e   :  { %53 = dma.hbm_to_vmem [thread:$0]  %s1378_s2, 4096, %s48_s12, [#allocation6], %s1207_s21, %s1207_s21, %s1208_s22  }
  0x2f   :  { %s1166_s0 = scalar_lea.vmem %s75_s14, 2048  ;;  %p1171_p7 = scmp.lt.s32.totalorder %s75_s14, %s75_s14 }
  0x30   :  { %p1167_p6 = scmp.ne.s32.totalorder %s75_s14, %s1166_s0  ;;  %p1172_p8 = scmp.lt.s32.totalorder %s1166_s0, %s1166_s0 }
  0x32   :  { %p1173_p9 = por %p1172_p8, %p1171_p7 }
  0x34   :  { %p1174_p10 = pnand %p1173_p9, %p1167_p6 }
  0x36   :  { %1177 = shalt.err (!%p1174_p10)
}
  0x37   :  { %80 = dma.hbm_to_vmem [thread:$0]  %s1380_s4, 2048, %s75_s14, [#allocation9], %s1207_s21, %s1207_s21, %s1208_s22  }
  0x38   :  { %1198 = dma.done.wait [#allocation3], 256  }
  0x39   :  { %1199 = vsyncadd [#allocation3], 4294967040 }
  0x3a   :  { %1200 = dma.done.wait [#allocation6], 8192  }
  0x3b   :  { %1201 = vsyncadd [#allocation6], 4294959104 }
  0x3c   :  { %1202 = dma.done.wait [#allocation9], 2176  }
  0x3d   :  { %1203 = vsyncadd [#allocation9], 4294965120  ;;  %v1215_v0 = vmov 0.0   ;;  %v132_v1 = vld [vmem:[#allocation5 + $0xc8] sm:$0xff]  ;;  %v134_v2 = vld [vmem:[#allocation5 + $0xd8] sm:$0xff]  ;;  %vm139_vm0 = vcmask 261120  }
  0x3e   :  { %210 = vmatprep.mubr.f32.mxu0 %v1215_v0  ;;  %287 = vmatprep.mubr.f32.mxu1 %v1215_v0  ;;  %v131_v3 = vld [vmem:[#allocation5 + $0xc0] sm:$0xff]  ;;  %v133_v4 = vld [vmem:[#allocation5 + $0xd0] sm:$0xff]  ;;  %v124_v5 = vld [vmem:[#allocation5 + $0x88] sm:$0xff]  ;;  %s1217_s2 = smov [#allocation11]  }
  0x3f   :  { %170 = vmatprep.subr.mxu0 %v132_v1  ;;  %247 = vmatprep.subr.mxu1 %v134_v2  ;;  %v126_v6 = vld [vmem:[#allocation5 + $0x98] sm:$0xff]  ;;  %v123_v7 = vld [vmem:[#allocation5 + $0x80] sm:$0xff]  ;;  %v125_v8 = vld [vmem:[#allocation5 + $0x90] sm:$0xff]  ;;  %s1039_s4 = sshll.u32 %s1217_s2, 4  ;;  %s1040_s4 = int_to_ptr.vmem [resolvable:$true] %s1039_s4 }
  0x40   :  { %171 = vmatpush1.msra.mxu0 %v131_v3  ;;  %248 = vmatpush1.msra.mxu1 %v133_v4  ;;  %v116_v9 = vld [vmem:[#allocation5 + $0x48] sm:$0xff]  ;;  %v118_v10 = vld [vmem:[#allocation5 + $0x58] sm:$0xff]  ;;  %v115_v11 = vld [vmem:[#allocation5 + $0x40] sm:$0xff]  ;;  %s1178_s19 = scalar_lea.vmem %s1040_s4, 128  ;;  %p1183_p12 = scmp.lt.s32.totalorder %s1040_s4, %s1040_s4 }
  0x41   :  { %172 = vmatprep.subr.mxu0 %v124_v5  ;;  %249 = vmatprep.subr.mxu1 %v126_v6  ;;  %v117_v12 = vld [vmem:[#allocation5 + $0x50] sm:$0xff]  ;;  %v108_v13 = vld [vmem:[#allocation5 + $0x8] sm:$0xff]  ;;  %v110_v14 = vld [vmem:[#allocation5 + $0x18] sm:$0xff]  ;;  %p1179_p11 = scmp.ne.s32.totalorder %s1040_s4, %s1178_s19  ;;  %p1184_p13 = scmp.lt.s32.totalorder %s1178_s19, %s1178_s19 }
  0x42   :  { %173 = vmatpush1.msra.mxu0 %v123_v7  ;;  %250 = vmatpush1.msra.mxu1 %v125_v8  ;;  %v107_v15 = vld [vmem:[#allocation5] sm:$0xff]  ;;  %v109_v16 = vld [vmem:[#allocation5 + $0x10] sm:$0xff]  ;;  %v136_v18 = vld [vmem:[#allocation5 + $0xe8] sm:$0xff] }
  0x43   :  { %174 = vmatprep.subr.mxu0 %v116_v9  ;;  %251 = vmatprep.subr.mxu1 %v118_v10  ;;  %v1274_v17 = vld [vmem:[#allocation2] sm:$0xff]  ;;  %v138_v19 = vld [vmem:[#allocation5 + $0xf8] sm:$0xff]  ;;  %v135_v20 = vld [vmem:[#allocation5 + $0xe0] sm:$0xff]  ;;  %p1185_p0 = por %p1184_p13, %p1183_p12 }
  0x44   :  { %175 = vmatpush1.msra.mxu0 %v115_v11  ;;  %252 = vmatpush1.msra.mxu1 %v117_v12  ;;  %v137_v21 = vld [vmem:[#allocation5 + $0xf0] sm:$0xff]  ;;  %v128_v22 = vld [vmem:[#allocation5 + $0xa8] sm:$0xff]  ;;  %v130_v23 = vld [vmem:[#allocation5 + $0xb8] sm:$0xff] }
  0x45   :  { %176 = vmatprep.subr.mxu0 %v108_v13  ;;  %253 = vmatprep.subr.mxu1 %v110_v14  ;;  %v127_v24 = vld [vmem:[#allocation5 + $0xa0] sm:$0xff]  ;;  %v129_v25 = vld [vmem:[#allocation5 + $0xb0] sm:$0xff]  ;;  %v1280_v26 = vld [vmem:[#allocation2 + $0x8] sm:$0xff]  ;;  %v812_v14 = vlaneseq  ;;  %p1186_p1 = pnand %p1185_p0, %p1179_p11 }
  0x46   :  { %177 = vmatpush1.msra.mxu0 %v107_v15  ;;  %254 = vmatpush1.msra.mxu1 %v109_v16  ;;  %v120_v27 = vld [vmem:[#allocation5 + $0x68] sm:$0xff]  ;;  %v122_v28 = vld [vmem:[#allocation5 + $0x78] sm:$0xff]  ;;  %v119_v29 = vld [vmem:[#allocation5 + $0x60] sm:$0xff] }
  0x47   :  { %1050 = vmatmul.mubr.msk.f32.vlgmr.msra.gmra.mxu0 %vm139_vm0, %v1274_v17  ;;  %1052 = vmatmul.mubr.msk.f32.vlgmr.msra.gmra.mxu1 %vm139_vm0, %v1274_v17  ;;  %v121_v30 = vld [vmem:[#allocation5 + $0x70] sm:$0xff]  ;;  %v112_v31 = vld [vmem:[#allocation5 + $0x28] sm:$0xff]  ;;  %v114_v32 = vld [vmem:[#allocation5 + $0x38] sm:$0xff]  ;;  %v1332_v16 = vshrl.u32 %v812_v14, 7 }
  0x48   :  { %324 = vmatprep.subr.mxu0 %v136_v18  ;;  %401 = vmatprep.subr.mxu1 %v138_v19  ;;  %v111_v33 = vld [vmem:[#allocation5 + $0x20] sm:$0xff]  ;;  %v113_v34 = vld [vmem:[#allocation5 + $0x30] sm:$0xff]  ;;  %v479_v35 = vld [vmem:[#allocation7 + $0xc8] sm:$0xff] }
  0x49   :  { %325 = vmatpush1.msra.mxu0 %v135_v20  ;;  %402 = vmatpush1.msra.mxu1 %v137_v21  ;;  %v481_v36 = vld [vmem:[#allocation7 + $0xd8] sm:$0xff]  ;;  %v478_v37 = vld [vmem:[#allocation7 + $0xc0] sm:$0xff]  ;;  %v480_v38 = vld [vmem:[#allocation7 + $0xd0] sm:$0xff]  ;;  %v814_v21 = vsub.s32 0, %v1332_v16 }
  0x4a   :  { %326 = vmatprep.subr.mxu0 %v128_v22  ;;  %403 = vmatprep.subr.mxu1 %v130_v23  ;;  %v471_v39 = vld [vmem:[#allocation7 + $0x88] sm:$0xff]  ;;  %v473_v40 = vld [vmem:[#allocation7 + $0x98] sm:$0xff]  ;;  %v470_v41 = vld [vmem:[#allocation7 + $0x80] sm:$0xff]  ;;  %v822_v23 = vsub.s32 2, %v1332_v16 }
  0x4b   :  { %216 = vmatprep.mubr.f32.mxu0 %v1215_v0  ;;  %293 = vmatprep.mubr.f32.mxu1 %v1215_v0  ;;  %v472_v42 = vld [vmem:[#allocation7 + $0x90] sm:$0xff]  ;;  %v463_v43 = vld [vmem:[#allocation7 + $0x48] sm:$0xff]  ;;  %v465_v44 = vld [vmem:[#allocation7 + $0x58] sm:$0xff] }
  0x4c   :  { %327 = vmatpush1.msra.mxu0 %v127_v24  ;;  %404 = vmatpush1.msra.mxu1 %v129_v25  ;;  %v462_v45 = vld [vmem:[#allocation7 + $0x40] sm:$0xff]  ;;  %v464_v46 = vld [vmem:[#allocation7 + $0x50] sm:$0xff]  ;;  %v455_v47 = vld [vmem:[#allocation7 + $0x8] sm:$0xff]  ;;  %v818_v24 = vsub.s32 1, %v1332_v16  ;;  %v826_v25 = vsub.s32 3, %v1332_v16 }
  0x4d   :  { %1051 = vmatmul.mubr.msk.f32.gmra.mxu0 %vm139_vm0, %v1280_v26  ;;  %1053 = vmatmul.mubr.msk.f32.gmra.mxu1 %vm139_vm0, %v1280_v26  ;;  %v457_v48 = vld [vmem:[#allocation7 + $0x18] sm:$0xff]  ;;  %v454_v49 = vld [vmem:[#allocation7] sm:$0xff]  ;;  %v456_v50 = vld [vmem:[#allocation7 + $0x10] sm:$0xff] }
  0x4e   :  { %328 = vmatprep.subr.mxu0 %v120_v27  ;;  %405 = vmatprep.subr.mxu1 %v122_v28  ;;  %v483_v51 = vld [vmem:[#allocation7 + $0xe8] sm:$0xff]  ;;  %v485_v52 = vld [vmem:[#allocation7 + $0xf8] sm:$0xff]  ;;  %v482_v53 = vld [vmem:[#allocation7 + $0xe0] sm:$0xff] }
  0x4f   :  { %329 = vmatpush1.msra.mxu0 %v119_v29  ;;  %406 = vmatpush1.msra.mxu1 %v121_v30  ;;  %v484_v54 = vld [vmem:[#allocation7 + $0xf0] sm:$0xff]  ;;  %v475_v55 = vld [vmem:[#allocation7 + $0xa8] sm:$0xff]  ;;  %v477_v56 = vld [vmem:[#allocation7 + $0xb8] sm:$0xff] }
  0x50   :  { %330 = vmatprep.subr.mxu0 %v112_v31  ;;  %407 = vmatprep.subr.mxu1 %v114_v32  ;;  %v474_v57 = vld [vmem:[#allocation7 + $0xa0] sm:$0xff]  ;;  %v476_v58 = vld [vmem:[#allocation7 + $0xb0] sm:$0xff]  ;;  %v467_v59 = vld [vmem:[#allocation7 + $0x68] sm:$0xff] }
  0x51   :  { %331 = vmatpush1.msra.mxu0 %v111_v33  ;;  %364 = vmatprep.mubr.f32.mxu0 %v1215_v0  ;;  %v469_v60 = vld [vmem:[#allocation7 + $0x78] sm:$0xff]  ;;  %v466_v61 = vld [vmem:[#allocation7 + $0x60] sm:$0xff]  ;;  %v468_v62 = vld [vmem:[#allocation7 + $0x70] sm:$0xff] }
  0x52   :  { %408 = vmatpush1.msra.mxu1 %v113_v34  ;;  %441 = vmatprep.mubr.f32.mxu1 %v1215_v0  ;;  %v459_v63 = vld [vmem:[#allocation7 + $0x28] sm:$0xff]  ;;  %v461_v1 = vld [vmem:[#allocation7 + $0x38] sm:$0xff]  ;;  %v458_v2 = vld [vmem:[#allocation7 + $0x20] sm:$0xff] }
  0x53   :  { %1054 = vmatmul.mubr.msk.f32.vlgmr.msra.gmra.mxu0 %vm139_vm0, %v1274_v17  ;;  %1056 = vmatmul.mubr.msk.f32.vlgmr.msra.gmra.mxu1 %vm139_vm0, %v1274_v17  ;;  %v460_v3 = vld [vmem:[#allocation7 + $0x30] sm:$0xff]  ;;  %v1343_v22 = vld [vmem:[#allocation8] sm:$0xff] }
  0x54   :  { %510 = vmatprep.subr.mxu0 %v479_v35  ;;  %587 = vmatprep.subr.mxu1 %v481_v36  ;;  %v815_v27 = vrot.slane %v1343_v22, %v814_v21  ;;  %v823_v31 = vrot.slane %v1343_v22, %v822_v23  ;;  %v819_v33 = vrot.slane %v1343_v22, %v818_v24  ;;  %v842_v21 = vsub.s32 7, %v1332_v16 }
  0x55   :  { %511 = vmatpush1.msra.mxu0 %v478_v37  ;;  %588 = vmatpush1.msra.mxu1 %v480_v38  ;;  %v827_v37 = vrot.slane %v1343_v22, %v826_v25 }
  0x56   :  { %512 = vmatprep.subr.mxu0 %v471_v39  ;;  %589 = vmatprep.subr.mxu1 %v473_v40  ;;  %v868_v39 = vld [vmem:[#allocation10] sm:$0xff] }
  0x57   :  { %370 = vmatprep.mubr.f32.mxu0 %v1215_v0  ;;  %447 = vmatprep.mubr.f32.mxu1 %v1215_v0 }
  0x58   :  { %513 = vmatpush1.msra.mxu0 %v470_v41  ;;  %590 = vmatpush1.msra.mxu1 %v472_v42  ;;  %v830_v41 = vsub.s32 4, %v1332_v16  ;;  %v870_v42 = vld [vmem:[#allocation10 + $0x10] sm:$0xff] }
  0x59   :  { %1055 = vmatmul.mubr.msk.f32.gmra.mxu0 %vm139_vm0, %v1280_v26  ;;  %1057 = vmatmul.mubr.msk.f32.gmra.mxu1 %vm139_vm0, %v1280_v26 }
  0x5a   :  { %514 = vmatprep.subr.mxu0 %v463_v43  ;;  %591 = vmatprep.subr.mxu1 %v465_v44 }
  0x5b   :  { %515 = vmatpush1.msra.mxu0 %v462_v45  ;;  %592 = vmatpush1.msra.mxu1 %v464_v46  ;;  %v838_v46 = vsub.s32 6, %v1332_v16 }
  0x5c   :  { %516 = vmatprep.subr.mxu0 %v455_v47  ;;  %593 = vmatprep.subr.mxu1 %v457_v48  ;;  %v869_v47 = vld [vmem:[#allocation10 + $0x8] sm:$0xff] }
  0x5d   :  { %517 = vmatpush1.msra.mxu0 %v454_v49  ;;  %550 = vmatprep.mubr.f32.mxu0 %v1215_v0 }
  0x5e   :  { %594 = vmatpush1.msra.mxu1 %v456_v50  ;;  %627 = vmatprep.mubr.f32.mxu1 %v1215_v0  ;;  %v871_v50 = vld [vmem:[#allocation10 + $0x18] sm:$0xff] }
  0x5f   :  { %1058 = vmatmul.mubr.msk.f32.vlgmr.msra.gmra.mxu0 %vm139_vm0, %v1274_v17  ;;  %1060 = vmatmul.mubr.msk.f32.vlgmr.msra.gmra.mxu1 %vm139_vm0, %v1274_v17 }
  0x60   :  { %664 = vmatprep.subr.mxu0 %v483_v51  ;;  %741 = vmatprep.subr.mxu1 %v485_v52 }
  0x61   :  { %665 = vmatpush1.msra.mxu0 %v482_v53  ;;  %742 = vmatpush1.msra.mxu1 %v484_v54 }
  0x62   :  { %666 = vmatprep.subr.mxu0 %v475_v55  ;;  %743 = vmatprep.subr.mxu1 %v477_v56  ;;  %v876_v56 = vld [vmem:[#allocation10 + $0x40] sm:$0xff] }
  0x63   :  { %556 = vmatprep.mubr.f32.mxu0 %v1215_v0  ;;  %633 = vmatprep.mubr.f32.mxu1 %v1215_v0 }
  0x64   :  { %667 = vmatpush1.msra.mxu0 %v474_v57  ;;  %744 = vmatpush1.msra.mxu1 %v476_v58  ;;  %v878_v57 = vld [vmem:[#allocation10 + $0x50] sm:$0xff] }
  0x65   :  { %1059 = vmatmul.mubr.msk.f32.gmra.mxu0 %vm139_vm0, %v1280_v26  ;;  %1061 = vmatmul.mubr.msk.f32.gmra.mxu1 %vm139_vm0, %v1280_v26 }
  0x66   :  { %668 = vmatprep.subr.mxu0 %v467_v59  ;;  %745 = vmatprep.subr.mxu1 %v469_v60  ;;  %v1355_v60 = vrot.slane %v1343_v22, %v830_v41 }
  0x67   :  { %669 = vmatpush1.msra.mxu0 %v466_v61  ;;  %746 = vmatpush1.msra.mxu1 %v468_v62 }
  0x68   :  { %670 = vmatprep.subr.mxu0 %v459_v63  ;;  %747 = vmatprep.subr.mxu1 %v461_v1  ;;  %v877_v1 = vld [vmem:[#allocation10 + $0x48] sm:$0xff] }
  0x69   :  { %671 = vmatpush1.msra.mxu0 %v458_v2  ;;  %704 = vmatprep.mubr.f32.mxu0 %v1215_v0  ;;  %v879_v2 = vld [vmem:[#allocation10 + $0x58] sm:$0xff] }
  0x6a   :  { %748 = vmatpush1.msra.mxu1 %v460_v3  ;;  %781 = vmatprep.mubr.f32.mxu1 %v1215_v0  ;;  %v839_v3 = vrot.slane %v1343_v22, %v838_v46 }
  0x6b   :  { %1062 = vmatmul.mubr.msk.f32.vlgmr.msra.gmra.mxu0 %vm139_vm0, %v1274_v17  ;;  %1064 = vmatmul.mubr.msk.f32.vlgmr.msra.gmra.mxu1 %vm139_vm0, %v1274_v17 }
  0x6c   :  { %710 = vmatprep.mubr.f32.mxu0 %v1215_v0  ;;  %787 = vmatprep.mubr.f32.mxu1 %v1215_v0 }
  0x6f   :  { %1063 = vmatmul.mubr.msk.f32.gmra.mxu0 %vm139_vm0, %v1280_v26  ;;  %1065 = vmatmul.mubr.msk.f32.gmra.mxu1 %vm139_vm0, %v1280_v26 }
 0x107   :  { %v212_v4 = vpop.f32.mrf.mxu0  ;;  %v289_v5 = vpop.f32.mrf.mxu1 }
 0x109   :  { %v214_v6 = vpop.f32.mrf.mxu0  ;;  %v291_v7 = vpop.f32.mrf.mxu1 }
 0x10d   :  { %v218_v8 = vpop.f32.mrf.mxu0  ;;  %v295_v9 = vpop.f32.mrf.mxu1 }
 0x10f   :  { %v220_v10 = vpop.f32.mrf.mxu0  ;;  %v297_v11 = vpop.f32.mrf.mxu1 }
 0x113   :  { %v1324_v12 = vpop.f32.mrf.mxu0  ;;  %v1326_v13 = vpop.f32.mrf.mxu1 }
 0x115   :  { %v1328_v0 = vpop.f32.mrf.mxu0  ;;  %v1330_v15 = vpop.f32.mrf.mxu1 }
 0x119   :  { %v1334_v17 = vpop.f32.mrf.mxu0  ;;  %v1336_v18 = vpop.f32.mrf.mxu1 }
 0x11b   :  { %v1338_v19 = vpop.f32.mrf.mxu0  ;;  %v1340_v20 = vpop.f32.mrf.mxu1 }
 0x11f   :  { %v552_v26 = vpop.f32.mrf.mxu0  ;;  %v629_v28 = vpop.f32.mrf.mxu1 }
 0x120   :  { %v794_v29 = vmul.f32 %v552_v26, %v212_v4  ;;  %v796_v30 = vmul.f32 %v629_v28, %v289_v5 }
 0x121   :  { %v554_v32 = vpop.f32.mrf.mxu0  ;;  %v631_v34 = vpop.f32.mrf.mxu1 }
 0x122   :  { %v795_v35 = vmul.f32 %v554_v32, %v214_v6  ;;  %v797_v36 = vmul.f32 %v631_v34, %v291_v7  ;;  %v852_v38 = vadd.f32 %v815_v27, %v794_v29  ;;  %v854_v40 = vadd.f32 %v823_v31, %v796_v30 }
 0x123   :  { %v834_v7 = vsub.s32 5, %v1332_v16 }
 0x124   :  { %v853_v43 = vadd.f32 %v819_v33, %v795_v35  ;;  %v855_v48 = vadd.f32 %v827_v37, %v797_v36  ;;  %v884_v49 = vmul.f32 %v868_v39, %v852_v38  ;;  %v886_v55 = vmul.f32 %v870_v42, %v854_v40  ;;  %v872_v42 = vld [vmem:[#allocation10 + $0x20] sm:$0xff] }
 0x125   :  { %v558_v44 = vpop.f32.mrf.mxu0  ;;  %v635_v45 = vpop.f32.mrf.mxu1  ;;  %v835_v36 = vrot.slane %v1343_v22, %v834_v7 }
 0x126   :  { %v802_v51 = vmul.f32 %v558_v44, %v218_v8  ;;  %v804_v52 = vmul.f32 %v635_v45, %v295_v9  ;;  %v885_v61 = vmul.f32 %v869_v47, %v853_v43  ;;  %v887_v4 = vmul.f32 %v871_v50, %v855_v48 }
 0x127   :  { %v560_v53 = vpop.f32.mrf.mxu0  ;;  %v637_v54 = vpop.f32.mrf.mxu1  ;;  %v900_v8 = vand.u32 2147483647, %v884_v49  ;;  %v902_v23 = vand.u32 2147483647, %v886_v55  ;;  %v843_v43 = vrot.slane %v1343_v22, %v842_v21 }
 0x128   :  { %v803_v58 = vmul.f32 %v560_v53, %v220_v10  ;;  %v805_v59 = vmul.f32 %v637_v54, %v297_v11  ;;  %v860_v62 = vadd.f32 %v815_v27, %v802_v51  ;;  %v862_v63 = vadd.f32 %v823_v31, %v804_v52  ;;  %v874_v51 = vld [vmem:[#allocation10 + $0x30] sm:$0xff] }
 0x129   :  { %v901_v27 = vand.u32 2147483647, %v885_v61 }
 0x12a   :  { %v861_v5 = vadd.f32 %v819_v33, %v803_v58  ;;  %v863_v6 = vadd.f32 %v827_v37, %v805_v59  ;;  %v892_v9 = vmul.f32 %v876_v56, %v860_v62  ;;  %v894_v14 = vmul.f32 %v878_v57, %v862_v63  ;;  %v873_v57 = vld [vmem:[#allocation10 + $0x28] sm:$0xff] }
 0x12b   :  { %v706_v10 = vpop.f32.mrf.mxu0  ;;  %v783_v11 = vpop.f32.mrf.mxu1  ;;  %v903_v33 = vand.u32 2147483647, %v887_v4 }
 0x12c   :  { %v893_v24 = vmul.f32 %v877_v1, %v861_v5  ;;  %v895_v25 = vmul.f32 %v879_v2, %v863_v6  ;;  %v798_v26 = vmul.f32 %v706_v10, %v1324_v12  ;;  %v908_v28 = vand.u32 2147483647, %v892_v9  ;;  %v880_v1 = vld [vmem:[#allocation10 + $0x60] sm:$0xff]  ;;  %v875_v5 = vld [vmem:[#allocation10 + $0x38] sm:$0xff] }
 0x12d   :  { %v910_v29 = vand.u32 2147483647, %v894_v14  ;;  %v800_v30 = vmul.f32 %v783_v11, %v1326_v13  ;;  %v708_v31 = vpop.f32.mrf.mxu0  ;;  %v785_v32 = vpop.f32.mrf.mxu1 }
 0x12e   :  { %v909_v34 = vand.u32 2147483647, %v893_v24  ;;  %v911_v35 = vand.u32 2147483647, %v895_v25  ;;  %v917_v37 = vadd.f32 %v908_v28, %v900_v8  ;;  %v856_v39 = vadd.f32 %v1355_v60, %v798_v26  ;;  %v883_v24 = vld [vmem:[#allocation10 + $0x78] sm:$0xff] }
 0x12f   :  { %v931_v38 = vadd.f32 %v910_v29, %v902_v23  ;;  %v799_v40 = vmul.f32 %v708_v31, %v1328_v0  ;;  %v712_v44 = vpop.f32.mrf.mxu0  ;;  %v789_v13 = vpop.f32.mrf.mxu1  ;;  %v858_v47 = vadd.f32 %v839_v3, %v800_v30  ;;  %v801_v48 = vmul.f32 %v785_v32, %v1330_v15  ;;  %v882_v15 = vld [vmem:[#allocation10 + $0x70] sm:$0xff]  ;;  %v881_v23 = vld [vmem:[#allocation10 + $0x68] sm:$0xff] }
 0x130   :  { %v924_v41 = vadd.f32 %v909_v34, %v901_v27  ;;  %v938_v12 = vadd.f32 %v911_v35, %v903_v33  ;;  %v918_v45 = vrot.slane %v917_v37, 4  ;;  %v888_v54 = vmul.f32 %v872_v42, %v856_v39 }
 0x131   :  { %v932_v46 = vrot.slane %v931_v38, 4  ;;  %v857_v55 = vadd.f32 %v835_v36, %v799_v40  ;;  %v806_v58 = vmul.f32 %v712_v44, %v1334_v17  ;;  %v808_v22 = vmul.f32 %v789_v13, %v1336_v18  ;;  %v714_v59 = vpop.f32.mrf.mxu0  ;;  %v791_v61 = vpop.f32.mrf.mxu1 }
 0x132   :  { %v925_v49 = vrot.slane %v924_v41, 4  ;;  %v939_v50 = vrot.slane %v938_v12, 4  ;;  %v919_v52 = vadd.f32 %v918_v45, %v917_v37  ;;  %v890_v62 = vmul.f32 %v874_v51, %v858_v47 }
 0x133   :  { %v933_v53 = vadd.f32 %v932_v46, %v931_v38  ;;  %v859_v63 = vadd.f32 %v843_v43, %v801_v48  ;;  %v864_v6 = vadd.f32 %v1355_v60, %v806_v58  ;;  %v866_v7 = vadd.f32 %v839_v3, %v808_v22 }
 0x134   :  { %v926_v0 = vadd.f32 %v925_v49, %v924_v41  ;;  %v940_v56 = vadd.f32 %v939_v50, %v938_v12  ;;  %v904_v8 = vand.u32 2147483647, %v888_v54  ;;  %v889_v9 = vmul.f32 %v873_v57, %v857_v55 }
 0x135   :  { %v807_v14 = vmul.f32 %v714_v59, %v1338_v19  ;;  %v809_v17 = vmul.f32 %v791_v61, %v1340_v20  ;;  %v920_v10 = vrot.slane %v919_v52, 2  ;;  %v934_v18 = vrot.slane %v933_v53, 2 }
 0x136   :  { %v927_v2 = vrot.slane %v926_v0, 2  ;;  %v941_v4 = vrot.slane %v940_v56, 2  ;;  %v896_v11 = vmul.f32 %v880_v1, %v864_v6  ;;  %v898_v21 = vmul.f32 %v882_v15, %v866_v7 }
 0x137   :  { %v906_v25 = vand.u32 2147483647, %v890_v62  ;;  %v891_v26 = vmul.f32 %v875_v5, %v859_v63  ;;  %v865_v27 = vadd.f32 %v835_v36, %v807_v14  ;;  %v867_v28 = vadd.f32 %v843_v43, %v809_v17 }
 0x138   :  { %v928_v29 = vadd.f32 %v927_v2, %v926_v0  ;;  %v942_v30 = vadd.f32 %v941_v4, %v940_v56  ;;  %v912_v60 = vand.u32 2147483647, %v896_v11  ;;  %v914_v3 = vand.u32 2147483647, %v898_v21 }
 0x139   :  { %v905_v31 = vand.u32 2147483647, %v889_v9  ;;  %v897_v32 = vmul.f32 %v881_v23, %v865_v27  ;;  %v899_v33 = vmul.f32 %v883_v24, %v867_v28  ;;  %v921_v19 = vadd.f32 %v920_v10, %v919_v52 }
 0x13a   :  { %v935_v34 = vadd.f32 %v934_v18, %v933_v53  ;;  %v945_v20 = vadd.f32 %v912_v60, %v904_v8  ;;  %v959_v35 = vadd.f32 %v914_v3, %v906_v25  ;;  %v907_v37 = vand.u32 2147483647, %v891_v26 }
 0x13b   :  { %v913_v38 = vand.u32 2147483647, %v897_v32  ;;  %v915_v39 = vand.u32 2147483647, %v899_v33  ;;  %v1216_v40 = vmov 1966171168  }
 0x13c   :  { %v986_v41 = vunpack.c.l.s4 %v1216_v40  ;;  %v929_v12 = vrot.slane %v928_v29, 1  ;;  %v943_v42 = vrot.slane %v942_v30, 1  ;;  %v946_v36 = vrot.slane %v945_v20, 4 }
 0x13d   :  { %v960_v43 = vrot.slane %v959_v35, 4  ;;  %v952_v44 = vadd.f32 %v913_v38, %v905_v31  ;;  %v966_v13 = vadd.f32 %v915_v39, %v907_v37  ;;  %v922_v45 = vrot.slane %v921_v19, 1 }
 0x13e   :  { %v936_v46 = vrot.slane %v935_v34, 1  ;;  %v947_v47 = vadd.f32 %v946_v36, %v945_v20  ;;  %v987_v51 = vunpack.c.0.s8 %v986_v41  ;;  %v930_v52 = vadd.f32 %v929_v12, %v928_v29 }
 0x13f   :  { %v961_v48 = vadd.f32 %v960_v43, %v959_v35  ;;  %v953_v49 = vrot.slane %v952_v44, 4  ;;  %v967_v50 = vrot.slane %v966_v13, 4  ;;  %v944_v53 = vadd.f32 %v943_v42, %v942_v30 }
 0x140   :  { %v948_v54 = vrot.slane %v947_v47, 2  ;;  %v923_v57 = vadd.f32 %v922_v45, %v921_v19  ;;  %v937_v58 = vadd.f32 %v936_v46, %v935_v34  ;;  %v990_v15 = vsub.s32 %v987_v51, %v1332_v16 }
 0x141   :  { %v962_v55 = vrot.slane %v961_v48, 2  ;;  %v954_v0 = vadd.f32 %v953_v49, %v952_v44  ;;  %v968_v56 = vadd.f32 %v967_v50, %v966_v13 }
 0x142   :  { %v949_v22 = vadd.f32 %v948_v54, %v947_v47  ;;  %v981_v63 = vcombine.low %v923_v57, %v930_v52  ;;  %v982_v1 = vcombine.low %v937_v58, %v944_v53 }
 0x143   :  { %v963_v59 = vadd.f32 %v962_v55, %v961_v48  ;;  %v955_v61 = vrot.slane %v954_v0, 2  ;;  %v969_v62 = vrot.slane %v968_v56, 2 }
 0x144   :  { %v950_v2 = vrot.slane %v949_v22, 1  ;;  %v991_v9 = vrot.slane %v981_v63, %v990_v15  ;;  %v998_v14 = vrot.slane %v982_v1, %v990_v15 }
 0x145   :  { %v964_v4 = vrot.slane %v963_v59, 1  ;;  %v956_v5 = vadd.f32 %v955_v61, %v954_v0  ;;  %v970_v6 = vadd.f32 %v969_v62, %v968_v56 }
 0x146   :  { %v951_v17 = vadd.f32 %v950_v2, %v949_v22  ;;  %v1013_v26 = vcombine.low %v991_v9, %v998_v14 }
 0x147   :  { %v957_v7 = vrot.slane %v956_v5, 1  ;;  %v971_v8 = vrot.slane %v970_v6, 1  ;;  %v965_v10 = vadd.f32 %v964_v4, %v963_v59 }
 0x148   :  { %v1021_v28 = vrot.slane %v1013_v26, %v990_v15 }
 0x149   :  { %v958_v18 = vadd.f32 %v957_v7, %v956_v5  ;;  %v972_v11 = vadd.f32 %v971_v8, %v970_v6 }
 0x14b   :  { %v983_v21 = vcombine.low %v951_v17, %v958_v18  ;;  %v984_v23 = vcombine.low %v965_v10, %v972_v11 }
 0x14d   :  { %v1005_v24 = vrot.slane %v983_v21, %v990_v15  ;;  %v1012_v25 = vrot.slane %v984_v23, %v990_v15 }
 0x14f   :  { %v1014_v27 = vcombine.low %v1005_v24, %v1012_v25 }
 0x151   :  { %v1028_v16 = vrot.slane %v1014_v27, %v990_v15 }
 0x153   :  { %v1029_v29 = vcombine.low %v1021_v28, %v1028_v16 }
 0x155   :  { %1032 = vst [vmem:[#allocation11] sm:$0xff] %v1029_v29 }
 0x156   :  { %1189 = shalt.err (!%p1186_p1)
}
 0x157   :  { %1042 = dma.vmem_to_hbm [thread:$0]  %s1040_s4, 128, %s1381_s5, [#allocation4]  }
 0x158   :  { %1204 = dma.done.wait [#allocation4], 128  }
 0x159   :  { %1205 = vsyncadd [#allocation4], 4294967168 }
 0x15a   :  { %1046 = vsyncpa [#allocation3], 1 }
 0x15b   :  { %1047 = vsyncpa [#allocation6], 1 }
 0x15c   :  { %1048 = vsyncpa [#allocation9], 1 }
 0x15d   :  { %1049 = vsyncpa [#allocation4], 1 }

</bundles_post_ra>
